<compile_context>
chip_gen: v7x
topology: tpu7x:2x2x1
jax: 0.10.0
libtpu: 0.0.40
codegen_flags: <defaults>
</compile_context>

<pallas_src>
import functools

import jax
import jax.numpy as jnp
from jax.experimental import pallas as pl
from jax.experimental.pallas import tpu as pltpu

D_IN = 256
D_HID = 512
LN_EPS = 1e-5
SUB_ROWS = 256  # target rows per intra-tile sub-chunk (MXU/VPU interleave)


def _round_up(v, m):
    return ((v + m - 1) // m) * m


def _ceeb_kernel(x_ref, gamma_ref, beta_ref, w1_ref, b1_ref, w2_ref, b2_ref,
                 o_ref, *, n_sub, sub_rows):
    # Hoist the (small) parameters once per tile; they are re-used by every sub-chunk.
    gamma = gamma_ref[...]          # (1, 256) f32
    beta = beta_ref[...]            # (1, 256) f32
    b1 = b1_ref[...]                # (1, 512) f32
    b2 = b2_ref[...]                # (1, 256) f32
    w1 = w1_ref[...]                # (256, 512) bf16
    w2 = w2_ref[...]                # (512, 256) bf16

    # Independent row sub-chunks: lets the LLO scheduler overlap the VPU work of chunk j+1
    # with the MXU work of chunk j.  Static Python loop -> static (zero-cost) ref slices.
    for c in range(n_sub):
        r0 = c * sub_rows
        x = x_ref[r0:r0 + sub_rows, :]
        if x.dtype != jnp.float32:          # skip a redundant whole-tile cast when already f32
            x = x.astype(jnp.float32)

        # LayerNorm over the last dim (biased variance, like torch.nn.LayerNorm), f32 math.
        mean = jnp.mean(x, axis=-1, keepdims=True)
        xc = x - mean
        var = jnp.mean(xc * xc, axis=-1, keepdims=True)
        ln = xc * jax.lax.rsqrt(var + LN_EPS)
        ln = ln * gamma + beta                                   # (sub_rows, 256) f32

        # MLP: Linear(256->512) -> ReLU -> Linear(512->256); bf16 MXU operands, f32 accumulate.
        h = jnp.dot(ln.astype(jnp.bfloat16), w1,
                    preferred_element_type=jnp.float32) + b1
        h = jnp.maximum(h, 0.0)                                  # (sub_rows, 512) f32
        f = jnp.dot(h.astype(jnp.bfloat16), w2,
                    preferred_element_type=jnp.float32) + b2

        # Residual: f_contour + ceeb_ln
        o_ref[r0:r0 + sub_rows, :] = (f + ln).astype(o_ref.dtype)


def ceeb_forward(x, gamma, beta, w1, b1, w2, b2, *, tm=None):
    """Fused CEEB forward.  x: (..., 256).  Output dtype follows x.dtype."""
    orig_shape = x.shape
    xf = x.reshape(-1, D_IN)
    n = xf.shape[0]

    if tm is None:
        # Big row tile amortizes the ~0.35 us per-grid-step overhead; 1024 rows keep the
        # double-buffered x/out tiles + (tm,512) hidden + bf16 weights well inside the
        # 32 MiB vmem limit set below (and inside v7x's 64 MiB physical VMEM).
        tm = min(1024, _round_up(n, 8))
        # v7x shards the "parallel" grid axis across its 2 TensorCores: make sure there are
        # at least two grid steps when there is enough work to split.
        if n >= 2 * SUB_ROWS and pl.cdiv(n, tm) < 2:
            tm = _round_up(pl.cdiv(n, 2), 8)
    tm = max(8, _round_up(tm, 8))   # sublane granularity

    # Intra-tile sub-chunking (only when it divides evenly; otherwise a single chunk).
    if tm % SUB_ROWS == 0 and tm >= SUB_ROWS:
        n_sub, sub_rows = tm // SUB_ROWS, SUB_ROWS
    else:
        n_sub, sub_rows = 1, tm

    # Keep params 2-D so the (8,128)-style tiling rules are trivially satisfied.
    gamma2 = gamma.reshape(1, D_IN).astype(jnp.float32)
    beta2 = beta.reshape(1, D_IN).astype(jnp.float32)
    b1_2 = b1.reshape(1, D_HID).astype(jnp.float32)
    b2_2 = b2.reshape(1, D_IN).astype(jnp.float32)
    # Weights go to the MXU as bf16 (f32 accumulate in-kernel): faster matmuls and half the
    # weight DMA/VMEM footprint.  This intentionally loosens numerics vs. a pure-f32 torch
    # reference (documented; see tolerance in __main__).
    w1_bf = w1.astype(jnp.bfloat16)
    w2_bf = w2.astype(jnp.bfloat16)

    grid = (pl.cdiv(n, tm),)   # ragged last tile handled by Pallas partial-block writeback

    # Advisory cost estimate so XLA can schedule around the fused block.
    flops = 2 * n * (D_IN * D_HID + D_HID * D_IN)
    bytes_accessed = (
        n * D_IN * xf.dtype.itemsize                    # x in
        + n * D_IN * jnp.dtype(x.dtype).itemsize        # out
        + (D_IN * D_HID + D_HID * D_IN) * 2             # bf16 weights
        + (D_IN * 3 + D_HID) * 4                        # gamma/beta/biases
    )
    cost = pl.CostEstimate(flops=flops, transcendentals=n,
                           bytes_accessed=bytes_accessed)

    out = pl.pallas_call(
        functools.partial(_ceeb_kernel, n_sub=n_sub, sub_rows=sub_rows),
        out_shape=jax.ShapeDtypeStruct((n, D_IN), x.dtype),
        grid_spec=pltpu.PrefetchScalarGridSpec(
            num_scalar_prefetch=0,
            grid=grid,
            in_specs=[
                pl.BlockSpec((tm, D_IN), lambda i: (i, 0)),       # x tile
                pl.BlockSpec((1, D_IN), lambda i: (0, 0)),        # gamma
                pl.BlockSpec((1, D_IN), lambda i: (0, 0)),        # beta
                pl.BlockSpec((D_IN, D_HID), lambda i: (0, 0)),    # w1 (bf16)
                pl.BlockSpec((1, D_HID), lambda i: (0, 0)),       # b1
                pl.BlockSpec((D_HID, D_IN), lambda i: (0, 0)),    # w2 (bf16)
                pl.BlockSpec((1, D_IN), lambda i: (0, 0)),        # b2
            ],
            out_specs=pl.BlockSpec((tm, D_IN), lambda i: (i, 0)),
        ),
        compiler_params=pltpu.CompilerParams(
            dimension_semantics=("parallel",),
            vmem_limit_bytes=32 * 1024 * 1024,
        ),
        cost_estimate=cost,
    )(xf, gamma2, beta2, w1_bf, b1_2, w2_bf, b2_2)

    return out.reshape(orig_shape)


def reference_forward(x, gamma, beta, w1, b1, w2, b2):
    xf = x.astype(jnp.float32)
    mean = jnp.mean(xf, axis=-1, keepdims=True)
    var = jnp.mean((xf - mean) ** 2, axis=-1, keepdims=True)
    ln = (xf - mean) / jnp.sqrt(var + LN_EPS) * gamma + beta
    h = jnp.maximum(ln @ w1 + b1, 0.0)
    f = h @ w2 + b2
    return (f + ln).astype(x.dtype)


if __name__ == "__main__":
    key = jax.random.PRNGKey(0)
    k_x, k_x2, k_g, k_b, k_w1, k_b1, k_w2, k_b2 = jax.random.split(key, 8)

    # Deterministic parameter init (synthetic; roughly mimics torch default scales).
    gamma = jnp.ones((D_IN,), jnp.float32) + 0.01 * jax.random.normal(k_g, (D_IN,))
    beta = 0.01 * jax.random.normal(k_b, (D_IN,), dtype=jnp.float32)
    w1 = jax.random.normal(k_w1, (D_IN, D_HID), dtype=jnp.float32) * (1.0 / jnp.sqrt(D_IN))
    b1 = 0.01 * jax.random.normal(k_b1, (D_HID,), dtype=jnp.float32)
    w2 = jax.random.normal(k_w2, (D_HID, D_IN), dtype=jnp.float32) * (1.0 / jnp.sqrt(D_HID))
    b2 = 0.01 * jax.random.normal(k_b2, (D_IN,), dtype=jnp.float32)

    # Test 1: small exact-fit shape (feature dim fixed at 256 by the module).
    B, S = 2, 8
    x = jax.random.normal(k_x, (B, S, D_IN), dtype=jnp.float32)
    out = jax.block_until_ready(ceeb_forward(x, gamma, beta, w1, b1, w2, b2))
    ref = reference_forward(x, gamma, beta, w1, b1, w2, b2)
    assert out.shape == x.shape
    # Tolerance loosened vs a pure-f32 path because the MXU matmuls use bf16 operands
    # (f32 accumulation); LN + residual remain f32.
    assert jnp.allclose(out, ref, atol=5e-2, rtol=5e-2), "mismatch vs reference (exact tile)"

    # Test 2: ragged grid (N not a multiple of tm) -> exercises the pad-free partial last tile.
    B2, S2 = 2, 20  # N = 40 rows, forced tm = 16 -> grid of 3 with a partial boundary block
    x2 = jax.random.normal(k_x2, (B2, S2, D_IN), dtype=jnp.float32)
    out2 = jax.block_until_ready(ceeb_forward(x2, gamma, beta, w1, b1, w2, b2, tm=16))
    ref2 = reference_forward(x2, gamma, beta, w1, b1, w2, b2)
    assert out2.shape == x2.shape
    assert jnp.allclose(out2, ref2, atol=5e-2, rtol=5e-2), "mismatch vs reference (ragged tile)"

    print("KERNEL_OK")
</pallas_src>

<mosaic_0001>
module attributes {stable_mosaic.version = 11 : i64} {
  func.func @_ceeb_kernel(%arg0: i32, %arg1: memref<16x256xf32, #tpu.memory_space<vmem>>, %arg2: memref<1x256xf32, #tpu.memory_space<vmem>>, %arg3: memref<1x256xf32, #tpu.memory_space<vmem>>, %arg4: memref<256x512xbf16, #tpu.memory_space<vmem>>, %arg5: memref<1x512xf32, #tpu.memory_space<vmem>>, %arg6: memref<512x256xbf16, #tpu.memory_space<vmem>>, %arg7: memref<1x256xf32, #tpu.memory_space<vmem>>, %arg8: memref<16x256xf32, #tpu.memory_space<vmem>>) attributes {dimension_semantics = [#tpu.dimension_semantics<parallel>], iteration_bounds = array<i64: 1>, scalar_prefetch = 0 : i64, scratch_operands = 0 : i64, tpu.core_type = #tpu.core_type<tc>, window_params = [{transform_indices = @transform_0, window_bounds = array<i64: 16, 256>}, {pipeline_mode = #tpu.pipeline_mode<synchronous>, transform_indices = @transform_1, window_bounds = array<i64: 1, 256>}, {pipeline_mode = #tpu.pipeline_mode<synchronous>, transform_indices = @transform_2, window_bounds = array<i64: 1, 256>}, {pipeline_mode = #tpu.pipeline_mode<synchronous>, transform_indices = @transform_3, window_bounds = array<i64: 256, 512>}, {pipeline_mode = #tpu.pipeline_mode<synchronous>, transform_indices = @transform_4, window_bounds = array<i64: 1, 512>}, {pipeline_mode = #tpu.pipeline_mode<synchronous>, transform_indices = @transform_5, window_bounds = array<i64: 512, 256>}, {pipeline_mode = #tpu.pipeline_mode<synchronous>, transform_indices = @transform_6, window_bounds = array<i64: 1, 256>}, {transform_indices = @transform_7, window_bounds = array<i64: 16, 256>}]} {
    %c0 = arith.constant 0 : index
    %c0_0 = arith.constant 0 : index
    %0 = vector.load %arg2[%c0, %c0_0] : memref<1x256xf32, #tpu.memory_space<vmem>>, vector<1x256xf32>
    %c0_1 = arith.constant 0 : index
    %c0_2 = arith.constant 0 : index
    %1 = vector.load %arg3[%c0_1, %c0_2] : memref<1x256xf32, #tpu.memory_space<vmem>>, vector<1x256xf32>
    %c0_3 = arith.constant 0 : index
    %c0_4 = arith.constant 0 : index
    %2 = vector.load %arg5[%c0_3, %c0_4] : memref<1x512xf32, #tpu.memory_space<vmem>>, vector<1x512xf32>
    %c0_5 = arith.constant 0 : index
    %c0_6 = arith.constant 0 : index
    %3 = vector.load %arg7[%c0_5, %c0_6] : memref<1x256xf32, #tpu.memory_space<vmem>>, vector<1x256xf32>
    %c0_7 = arith.constant 0 : index
    %c0_8 = arith.constant 0 : index
    %4 = vector.load %arg4[%c0_7, %c0_8] : memref<256x512xbf16, #tpu.memory_space<vmem>>, vector<256x512xbf16>
    %c0_9 = arith.constant 0 : index
    %c0_10 = arith.constant 0 : index
    %5 = vector.load %arg6[%c0_9, %c0_10] : memref<512x256xbf16, #tpu.memory_space<vmem>>, vector<512x256xbf16>
    %c0_11 = arith.constant 0 : index
    %c0_12 = arith.constant 0 : index
    %6 = vector.load %arg1[%c0_11, %c0_12] : memref<16x256xf32, #tpu.memory_space<vmem>>, vector<16x256xf32>
    %cst = arith.constant dense<0.000000e+00> : vector<16xf32>
    %7 = vector.multi_reduction <add>, %6, %cst [1] : vector<16x256xf32> to vector<16xf32>
    %8 = vector.shape_cast %7 : vector<16xf32> to vector<16x1xf32>
    %cst_13 = arith.constant 2.560000e+02 : f32
    %9 = vector.broadcast %cst_13 : f32 to vector<16x1xf32>
    %10 = arith.divf %8, %9 : vector<16x1xf32>
    %11 = vector.broadcast %10 : vector<16x1xf32> to vector<16x256xf32>
    %12 = arith.subf %6, %11 : vector<16x256xf32>
    %13 = arith.mulf %12, %12 : vector<16x256xf32>
    %cst_14 = arith.constant dense<0.000000e+00> : vector<16xf32>
    %14 = vector.multi_reduction <add>, %13, %cst_14 [1] : vector<16x256xf32> to vector<16xf32>
    %15 = vector.shape_cast %14 : vector<16xf32> to vector<16x1xf32>
    %cst_15 = arith.constant 2.560000e+02 : f32
    %16 = vector.broadcast %cst_15 : f32 to vector<16x1xf32>
    %17 = arith.divf %15, %16 : vector<16x1xf32>
    %cst_16 = arith.constant 9.99999974E-6 : f32
    %18 = vector.broadcast %cst_16 : f32 to vector<16x1xf32>
    %19 = arith.addf %17, %18 : vector<16x1xf32>
    %20 = math.rsqrt %19 : vector<16x1xf32>
    %21 = vector.broadcast %20 : vector<16x1xf32> to vector<16x256xf32>
    %22 = arith.mulf %12, %21 : vector<16x256xf32>
    %23 = vector.broadcast %0 : vector<1x256xf32> to vector<16x256xf32>
    %24 = arith.mulf %22, %23 : vector<16x256xf32>
    %25 = vector.broadcast %1 : vector<1x256xf32> to vector<16x256xf32>
    %26 = arith.addf %24, %25 : vector<16x256xf32>
    %27 = arith.truncf %26 : vector<16x256xf32> to vector<16x256xbf16>
    %cst_17 = arith.constant dense<0.000000e+00> : vector<16x512xf32>
    %28 = tpu.matmul %27, %4, %cst_17 {dimension_numbers = #tpu.dot_dimension_numbers<[1], [0], [0], [1], [0, 0, 1, 1], [], []>} : vector<16x256xbf16>, vector<256x512xbf16>, vector<16x512xf32> -> vector<16x512xf32>
    %29 = vector.broadcast %2 : vector<1x512xf32> to vector<16x512xf32>
    %30 = arith.addf %28, %29 : vector<16x512xf32>
    %cst_18 = arith.constant 0.000000e+00 : f32
    %31 = vector.broadcast %cst_18 : f32 to vector<16x512xf32>
    %32 = arith.maximumf %30, %31 : vector<16x512xf32>
    %33 = arith.truncf %32 : vector<16x512xf32> to vector<16x512xbf16>
    %cst_19 = arith.constant dense<0.000000e+00> : vector<16x256xf32>
    %34 = tpu.matmul %33, %5, %cst_19 {dimension_numbers = #tpu.dot_dimension_numbers<[1], [0], [0], [1], [0, 0, 1, 1], [], []>} : vector<16x512xbf16>, vector<512x256xbf16>, vector<16x256xf32> -> vector<16x256xf32>
    %35 = vector.broadcast %3 : vector<1x256xf32> to vector<16x256xf32>
    %36 = arith.addf %34, %35 : vector<16x256xf32>
    %37 = arith.addf %36, %26 : vector<16x256xf32>
    %c0_20 = arith.constant 0 : index
    %c0_21 = arith.constant 0 : index
    %38 = vector.load %arg8[%c0_20, %c0_21] : memref<16x256xf32, #tpu.memory_space<vmem>>, vector<16x256xf32>
    tpu.vector_store %arg8[%c0_20, %c0_21], %37 {strides = array<i32>} : memref<16x256xf32, #tpu.memory_space<vmem>>, vector<16x256xf32>,
    return
  }
  func.func @transform_0(%arg0: i32) -> (i32, i32) {
    %c0_i32 = arith.constant 0 : i32
    %c0_i32_0 = arith.constant 0 : i32
    return %arg0, %c0_i32 : i32, i32
  }
  func.func @transform_1(%arg0: i32) -> (i32, i32) {
    %c0_i32 = arith.constant 0 : i32
    %c0_i32_0 = arith.constant 0 : i32
    %c0_i32_1 = arith.constant 0 : i32
    return %c0_i32, %c0_i32_0 : i32, i32
  }
  func.func @transform_2(%arg0: i32) -> (i32, i32) {
    %c0_i32 = arith.constant 0 : i32
    %c0_i32_0 = arith.constant 0 : i32
    %c0_i32_1 = arith.constant 0 : i32
    return %c0_i32, %c0_i32_0 : i32, i32
  }
  func.func @transform_3(%arg0: i32) -> (i32, i32) {
    %c0_i32 = arith.constant 0 : i32
    %c0_i32_0 = arith.constant 0 : i32
    %c0_i32_1 = arith.constant 0 : i32
    return %c0_i32, %c0_i32_0 : i32, i32
  }
  func.func @transform_4(%arg0: i32) -> (i32, i32) {
    %c0_i32 = arith.constant 0 : i32
    %c0_i32_0 = arith.constant 0 : i32
    %c0_i32_1 = arith.constant 0 : i32
    return %c0_i32, %c0_i32_0 : i32, i32
  }
  func.func @transform_5(%arg0: i32) -> (i32, i32) {
    %c0_i32 = arith.constant 0 : i32
    %c0_i32_0 = arith.constant 0 : i32
    %c0_i32_1 = arith.constant 0 : i32
    return %c0_i32, %c0_i32_0 : i32, i32
  }
  func.func @transform_6(%arg0: i32) -> (i32, i32) {
    %c0_i32 = arith.constant 0 : i32
    %c0_i32_0 = arith.constant 0 : i32
    %c0_i32_1 = arith.constant 0 : i32
    return %c0_i32, %c0_i32_0 : i32, i32
  }
  func.func @transform_7(%arg0: i32) -> (i32, i32) {
    %c0_i32 = arith.constant 0 : i32
    %c0_i32_0 = arith.constant 0 : i32
    return %arg0, %c0_i32 : i32, i32
  }
}

</mosaic_0001>

<bundles_post_ra>
// kernel: tpu_custom_call.1
= control target key start
LH: loop header
LB: loop body
LE: loop exit
PB: predicated region body
PF: predicated region fallthrough
CT: control target
= control target key end

     0   :  { %12 = vsyncpa [#allocation3], 0  ;;  %s1828_s0 = inlined_call_operand.hbm [shape: f32[16,256], index: 0, kind: input, shape index: {}]   ;;  %s1829_s1 = inlined_call_operand.vmem [shape: f32[1,256], index: 1, kind: input, shape index: {}]   ;;  %s1830_s2 = inlined_call_operand.hbm [shape: f32[1,256], index: 2, kind: input, shape index: {}]   ;;  %s1831_s3 = inlined_call_operand.hbm [shape: bf16[256,512], index: 3, kind: input, shape index: {}]   ;;  %s1832_s4 = inlined_call_operand.vmem [shape: f32[1,512], index: 4, kind: input, shape index: {}]   ;;  %s1833_s5 = inlined_call_operand.hbm [shape: bf16[512,256], index: 5, kind: input, shape index: {}]   ;;  %s1834_s6 = inlined_call_operand.vmem [shape: f32[1,256], index: 6, kind: input, shape index: {}]   ;;  %s1835_s7 = inlined_call_operand.hbm [shape: f32[16,256], index: 7, kind: output, shape index: {}]  }
   0x1   :  { %13 = vsyncpa [#allocation6], 0 }
   0x2   :  { %14 = vsyncpa [#allocation9], 0 }
   0x3   :  { %15 = vsyncpa [#allocation4], 0  ;;  %s1623_s24 = smov [#allocation5]   ;;  %s1624_s26 = smov [#allocation2]  }
   0x4   :  { %s36_s25 = sshll.u32 %s1623_s24, 4  ;;  %s21_s27 = sshll.u32 %s1624_s26, 4  ;;  %s37_s25 = int_to_ptr.vmem [resolvable:$true] %s36_s25  ;;  %s1672_s27 = int_to_ptr.vmem [resolvable:$true] %s21_s27 }
   0x5   :  { %s1505_s30 = scalar_lea.hbm %s1830_s2, 32 }
   0x6   :  { %p1506_p0 = scmp.ne.s32.totalorder %s1830_s2, %s1505_s30  ;;  %p1509_p1 = scmp.lt.u32.totalorder %s1505_s30, %s1830_s2 }
   0x8   :  { %p1511_p2 = pnand %p1509_p1, %p1506_p0 }
   0xa   :  { %1514 = shalt.err (!%p1511_p2)
}
   0xb   :  { %s1515_s12 = scalar_lea.vmem %s37_s25, 32  ;;  %p1520_p4 = scmp.lt.s32.totalorder %s37_s25, %s37_s25 }
   0xc   :  { %p1516_p3 = scmp.ne.s32.totalorder %s37_s25, %s1515_s12  ;;  %p1521_p5 = scmp.lt.s32.totalorder %s1515_s12, %s1515_s12 }
   0xe   :  { %p1522_p6 = por %p1521_p5, %p1520_p4 }
  0x10   :  { %p1523_p7 = pnand %p1522_p6, %p1516_p3 }
  0x12   :  { %1526 = shalt.err (!%p1523_p7)
}
  0x13   :  { %39 = dma.hbm_to_vmem [thread:$0]  %s1830_s2, 32, %s37_s25, [#allocation6]  }
  0x14   :  { %s1527_s17 = scalar_lea.hbm %s1828_s0, 512 }
  0x15   :  { %p1528_p8 = scmp.ne.s32.totalorder %s1828_s0, %s1527_s17  ;;  %p1531_p9 = scmp.lt.u32.totalorder %s1527_s17, %s1828_s0 }
  0x17   :  { %p1533_p10 = pnand %p1531_p9, %p1528_p8 }
  0x19   :  { %1536 = shalt.err (!%p1533_p10)
}
  0x1a   :  { %s1537_s22 = scalar_lea.vmem %s1672_s27, 512  ;;  %p1542_p12 = scmp.lt.s32.totalorder %s1672_s27, %s1672_s27 }
  0x1b   :  { %p1538_p11 = scmp.ne.s32.totalorder %s1672_s27, %s1537_s22  ;;  %p1543_p13 = scmp.lt.s32.totalorder %s1537_s22, %s1537_s22 }
  0x1d   :  { %p1544_p0 = por %p1543_p13, %p1542_p12 }
  0x1f   :  { %p1545_p1 = pnand %p1544_p0, %p1538_p11 }
  0x21   :  { %1548 = shalt.err (!%p1545_p1)
}
  0x22   :  { %s1625_s2 = smov 256   ;;  %s1626_s23 = smov 16  }
  0x23   :  { %27 = dma.hbm_to_vmem [thread:$0]  %s1828_s0, 512, %s1672_s27, [#allocation3], %s1625_s2, %s1625_s2, %s1626_s23  }
  0x24   :  { %s1627_s26 = smov [#allocation7]   ;;  %s1628_s29 = smov [#allocation8]  }
  0x25   :  { %s45_s28 = sshll.u32 %s1627_s26, 4  ;;  %s59_s30 = sshll.u32 %s1628_s29, 4  ;;  %s46_s28 = int_to_ptr.vmem [resolvable:$true] %s45_s28  ;;  %s1706_s30 = int_to_ptr.vmem [resolvable:$true] %s59_s30 }
  0x26   :  { %s1549_s10 = scalar_lea.hbm %s1831_s3, 8192 }
  0x27   :  { %p1550_p2 = scmp.ne.s32.totalorder %s1831_s3, %s1549_s10  ;;  %p1553_p3 = scmp.lt.u32.totalorder %s1549_s10, %s1831_s3 }
  0x29   :  { %p1555_p4 = pnand %p1553_p3, %p1550_p2 }
  0x2b   :  { %1558 = shalt.err (!%p1555_p4)
}
  0x2c   :  { %s1559_s0 = scalar_lea.vmem %s46_s28, 8192  ;;  %p1564_p6 = scmp.lt.s32.totalorder %s46_s28, %s46_s28 }
  0x2d   :  { %p1560_p5 = scmp.ne.s32.totalorder %s46_s28, %s1559_s0  ;;  %p1565_p7 = scmp.lt.s32.totalorder %s1559_s0, %s1559_s0 }
  0x2f   :  { %p1566_p8 = por %p1565_p7, %p1564_p6 }
  0x31   :  { %p1567_p9 = pnand %p1566_p8, %p1560_p5 }
  0x33   :  { %1570 = shalt.err (!%p1567_p9)
}
  0x34   :  { %51 = dma.hbm_to_vmem [thread:$0]  %s1831_s3, 8192, %s46_s28, [#allocation6], %s1625_s2, %s1625_s2, %s1626_s23  }
  0x35   :  { %s1571_s18 = scalar_lea.hbm %s1833_s5, 8192 }
  0x36   :  { %p1572_p10 = scmp.ne.s32.totalorder %s1833_s5, %s1571_s18  ;;  %p1575_p11 = scmp.lt.u32.totalorder %s1571_s18, %s1833_s5 }
  0x38   :  { %p1577_p12 = pnand %p1575_p11, %p1572_p10 }
  0x3a   :  { %1580 = shalt.err (!%p1577_p12)
}
  0x3b   :  { %s1581_s24 = scalar_lea.vmem %s1706_s30, 8192  ;;  %p1586_p0 = scmp.lt.s32.totalorder %s1706_s30, %s1706_s30 }
  0x3c   :  { %p1582_p13 = scmp.ne.s32.totalorder %s1706_s30, %s1581_s24  ;;  %p1587_p1 = scmp.lt.s32.totalorder %s1581_s24, %s1581_s24 }
  0x3e   :  { %p1588_p2 = por %p1587_p1, %p1586_p0 }
  0x40   :  { %p1589_p3 = pnand %p1588_p2, %p1582_p13 }
  0x42   :  { %1592 = shalt.err (!%p1589_p3)
}
  0x43   :  { %s1629_s3 = smov 128   ;;  %s1630_s25 = smov 8  }
  0x44   :  { %65 = dma.hbm_to_vmem [thread:$0]  %s1833_s5, 8192, %s1706_s30, [#allocation9], %s1629_s3, %s1629_s3, %s1630_s25  }
  0x45   :  { %1615 = dma.done.wait [#allocation3], 512  }
  0x46   :  { %1616 = vsyncadd [#allocation3], 4294966784 }
  0x47   :  { %1617 = dma.done.wait [#allocation6], 8224  }
  0x48   :  { %1618 = vsyncadd [#allocation6], 4294959072 }
  0x49   :  { %1619 = dma.done.wait [#allocation9], 8192  }
  0x4a   :  { %1620 = vsyncadd [#allocation9], 4294959104  ;;  %v212_v0 = vld [vmem:[#allocation2] sm:$0xff]  ;;  %v213_v1 = vld [vmem:[#allocation2 + $0x8] sm:$0xff]  ;;  %s1631_s9 = smov [#allocation10]  }
  0x4b   :  { %v214_v2 = vld [vmem:[#allocation2 + $0x10] sm:$0xff]  ;;  %v216_v3 = vadd.f32 %v213_v1, %v212_v0  ;;  %v215_v4 = vld [vmem:[#allocation2 + $0x18] sm:$0xff]  ;;  %v1407_v54 = vld [vmem:[#allocation8] ss:$8 sps:$4 sm:$0xff]   ;;  %s1150_s10 = sshll.u32 %s1631_s9, 4  ;;  %s1151_s10 = int_to_ptr.vmem [resolvable:$true] %s1150_s10 }
  0x4c   :  { %v219_v5 = vadd.f32 %v215_v4, %v214_v2  ;;  %v1309_v6 = vld [vmem:[#allocation7 + $0x4] ss:$16 sps:$4 sm:$0xff]   ;;  %v1311_v7 = vld [vmem:[#allocation7] ss:$16 sps:$4 sm:$0xff]   ;;  %v1359_v52 = vld [vmem:[#allocation7 + $0xc] ss:$16 sps:$4 sm:$0xff]   ;;  %p1598_p5 = scmp.lt.s32.totalorder %s1151_s10, %s1151_s10 }
  0x4d   :  { %217 = vadd.xlane.f32.xlu0 %v216_v3  ;;  %v1312_v8 = vld [vmem:[#allocation7 + $0x24] ss:$16 sps:$4 sm:$0xff]   ;;  %622 = vmatprep.subr.bf16.mxu1 %v1309_v6  ;;  %v1314_v9 = vld [vmem:[#allocation7 + $0x20] ss:$16 sps:$4 sm:$0xff]  }
  0x4e   :  { %623 = vmatpush1.bf16.msra.mxu1 %v1311_v7  ;;  %v1315_v10 = vld [vmem:[#allocation7 + $0x44] ss:$16 sps:$4 sm:$0xff]   ;;  %v1317_v11 = vld [vmem:[#allocation7 + $0x40] ss:$16 sps:$4 sm:$0xff]  }
  0x4f   :  { %624 = vmatprep.subr.bf16.mxu1 %v1312_v8  ;;  %v1318_v12 = vld [vmem:[#allocation7 + $0x64] ss:$16 sps:$4 sm:$0xff]   ;;  %v1320_v13 = vld [vmem:[#allocation7 + $0x60] ss:$16 sps:$4 sm:$0xff]  }
  0x50   :  { %v1321_v14 = vld [vmem:[#allocation7 + $0x84] ss:$16 sps:$4 sm:$0xff]   ;;  %v1323_v15 = vld [vmem:[#allocation7 + $0x80] ss:$16 sps:$4 sm:$0xff]  }
  0x51   :  { %220 = vadd.xlane.f32.xlu0 %v219_v5  ;;  %v1324_v16 = vld [vmem:[#allocation7 + $0xa4] ss:$16 sps:$4 sm:$0xff]   ;;  %v1326_v17 = vld [vmem:[#allocation7 + $0xa0] ss:$16 sps:$4 sm:$0xff]  }
  0x52   :  { %625 = vmatpush1.bf16.msra.mxu1 %v1314_v9  ;;  %v1327_v18 = vld [vmem:[#allocation7 + $0xc4] ss:$16 sps:$4 sm:$0xff]   ;;  %v1329_v19 = vld [vmem:[#allocation7 + $0xc0] ss:$16 sps:$4 sm:$0xff]  }
  0x53   :  { %626 = vmatprep.subr.bf16.mxu1 %v1315_v10  ;;  %v1330_v20 = vld [vmem:[#allocation7 + $0xe4] ss:$16 sps:$4 sm:$0xff]   ;;  %v1332_v21 = vld [vmem:[#allocation7 + $0xe0] ss:$16 sps:$4 sm:$0xff]  }
  0x54   :  { %v1333_v22 = vld [vmem:[#allocation7 + $0x104] ss:$16 sps:$4 sm:$0xff]   ;;  %v1335_v23 = vld [vmem:[#allocation7 + $0x100] ss:$16 sps:$4 sm:$0xff]  }
  0x55   :  { %v1336_v38 = vld [vmem:[#allocation7 + $0x124] ss:$16 sps:$4 sm:$0xff]   ;;  %v1338_v39 = vld [vmem:[#allocation7 + $0x120] ss:$16 sps:$4 sm:$0xff]  }
  0x56   :  { %627 = vmatpush1.bf16.msra.mxu1 %v1317_v11  ;;  %v1339_v40 = vld [vmem:[#allocation7 + $0x144] ss:$16 sps:$4 sm:$0xff]   ;;  %v1341_v41 = vld [vmem:[#allocation7 + $0x140] ss:$16 sps:$4 sm:$0xff]  }
  0x57   :  { %628 = vmatprep.subr.bf16.mxu1 %v1318_v12  ;;  %v1342_v42 = vld [vmem:[#allocation7 + $0x164] ss:$16 sps:$4 sm:$0xff]   ;;  %v1344_v43 = vld [vmem:[#allocation7 + $0x160] ss:$16 sps:$4 sm:$0xff]  }
  0x58   :  { %v1345_v44 = vld [vmem:[#allocation7 + $0x184] ss:$16 sps:$4 sm:$0xff]   ;;  %v1347_v45 = vld [vmem:[#allocation7 + $0x180] ss:$16 sps:$4 sm:$0xff]  }
  0x59   :  { %v1348_v46 = vld [vmem:[#allocation7 + $0x1a4] ss:$16 sps:$4 sm:$0xff]   ;;  %v1350_v47 = vld [vmem:[#allocation7 + $0x1a0] ss:$16 sps:$4 sm:$0xff]  }
  0x5a   :  { %629 = vmatpush1.bf16.msra.mxu1 %v1320_v13  ;;  %v1351_v48 = vld [vmem:[#allocation7 + $0x1c4] ss:$16 sps:$4 sm:$0xff]   ;;  %v1353_v49 = vld [vmem:[#allocation7 + $0x1c0] ss:$16 sps:$4 sm:$0xff]  }
  0x5b   :  { %630 = vmatprep.subr.bf16.mxu1 %v1321_v14  ;;  %v1354_v50 = vld [vmem:[#allocation7 + $0x1e4] ss:$16 sps:$4 sm:$0xff]   ;;  %v1356_v51 = vld [vmem:[#allocation7 + $0x1e0] ss:$16 sps:$4 sm:$0xff]   ;;  %v250_v14 = vlaneseq }
  0x5c   :  { %v1405_v53 = vld [vmem:[#allocation8 + $0x4] ss:$8 sps:$4 sm:$0xff]   ;;  %v1408_v55 = vld [vmem:[#allocation8 + $0x14] ss:$8 sps:$4 sm:$0xff]   ;;  %v1410_v56 = vld [vmem:[#allocation8 + $0x10] ss:$8 sps:$4 sm:$0xff]  }
  0x5d   :  { %1051 = vmatprep.subr.bf16.mxu0 %v1405_v53  ;;  %v1411_v57 = vld [vmem:[#allocation8 + $0x24] ss:$8 sps:$4 sm:$0xff]   ;;  %v1413_v58 = vld [vmem:[#allocation8 + $0x20] ss:$8 sps:$4 sm:$0xff]   ;;  %v1414_v59 = vld [vmem:[#allocation8 + $0x34] ss:$8 sps:$4 sm:$0xff]  }
  0x5e   :  { %631 = vmatpush1.bf16.msra.mxu1 %v1323_v15  ;;  %1052 = vmatpush1.bf16.msra.mxu0 %v1407_v54  ;;  %v1416_v60 = vld [vmem:[#allocation8 + $0x30] ss:$8 sps:$4 sm:$0xff]   ;;  %v1417_v61 = vld [vmem:[#allocation8 + $0x44] ss:$8 sps:$4 sm:$0xff]   ;;  %v1419_v62 = vld [vmem:[#allocation8 + $0x40] ss:$8 sps:$4 sm:$0xff]  }
  0x5f   :  { %632 = vmatprep.subr.bf16.mxu1 %v1324_v16  ;;  %1053 = vmatprep.subr.bf16.mxu0 %v1408_v55  ;;  %v1420_v63 = vld [vmem:[#allocation8 + $0x54] ss:$8 sps:$4 sm:$0xff]   ;;  %v1429_v5 = vld [vmem:[#allocation8 + $0x84] ss:$8 sps:$4 sm:$0xff]   ;;  %v1431_v6 = vld [vmem:[#allocation8 + $0x80] ss:$8 sps:$4 sm:$0xff]  }
  0x60   :  { %v1426_v3 = vld [vmem:[#allocation8 + $0x74] ss:$8 sps:$4 sm:$0xff]   ;;  %v1434_v9 = vld [vmem:[#allocation8 + $0x90] ss:$8 sps:$4 sm:$0xff]   ;;  %v1435_v11 = vld [vmem:[#allocation8 + $0xa4] ss:$8 sps:$4 sm:$0xff]  }
  0x61   :  { %v1432_v7 = vld [vmem:[#allocation8 + $0x94] ss:$8 sps:$4 sm:$0xff]   ;;  %v1437_v15 = vld [vmem:[#allocation8 + $0xa0] ss:$8 sps:$4 sm:$0xff]  }
  0x62   :  { %633 = vmatpush1.bf16.msra.mxu1 %v1326_v17  ;;  %1054 = vmatpush1.bf16.msra.mxu0 %v1410_v56  ;;  %v1438_v17 = vld [vmem:[#allocation8 + $0xb4] ss:$8 sps:$4 sm:$0xff]   ;;  %v1363_v53 = vld [vmem:[#allocation7 + $0x48] ss:$16 sps:$4 sm:$0xff]  }
  0x63   :  { %634 = vmatprep.subr.bf16.mxu1 %v1327_v18  ;;  %1055 = vmatprep.subr.bf16.mxu0 %v1411_v57  ;;  %v1368_v54 = vld [vmem:[#allocation7 + $0x6c] ss:$16 sps:$4 sm:$0xff]   ;;  %v1366_v55 = vld [vmem:[#allocation7 + $0x68] ss:$16 sps:$4 sm:$0xff]  }
  0x64   :  { %v1371_v56 = vld [vmem:[#allocation7 + $0x8c] ss:$16 sps:$4 sm:$0xff]   ;;  %v1369_v57 = vld [vmem:[#allocation7 + $0x88] ss:$16 sps:$4 sm:$0xff]  }
  0x66   :  { %635 = vmatpush1.bf16.msra.mxu1 %v1329_v19  ;;  %1056 = vmatpush1.bf16.msra.mxu0 %v1413_v58  ;;  %v1756_v19 = vshrl.u32 %v250_v14, 7  ;;  %v1374_v58 = vld [vmem:[#allocation7 + $0xac] ss:$16 sps:$4 sm:$0xff]  }
  0x67   :  { %636 = vmatprep.subr.bf16.mxu1 %v1330_v20  ;;  %1057 = vmatprep.subr.bf16.mxu0 %v1414_v59  ;;  %v1440_v20 = vld [vmem:[#allocation8 + $0xb0] ss:$8 sps:$4 sm:$0xff]   ;;  %v1404_v14 = vld [vmem:[#allocation7 + $0x1ec] ss:$16 sps:$4 sm:$0xff]  }
  0x68   :  { %v1372_v59 = vld [vmem:[#allocation7 + $0xa8] ss:$16 sps:$4 sm:$0xff]  }
  0x6a   :  { %637 = vmatpush1.bf16.msra.mxu1 %v1332_v21  ;;  %1058 = vmatpush1.bf16.msra.mxu0 %v1416_v60  ;;  %v1441_v21 = vld [vmem:[#allocation8 + $0xc4] ss:$8 sps:$4 sm:$0xff]  }
  0x6b   :  { %638 = vmatprep.subr.bf16.mxu1 %v1333_v22  ;;  %1059 = vmatprep.subr.bf16.mxu0 %v1417_v61  ;;  %v1759_v22 = vsub.s32 0, %v1756_v19  ;;  %v1377_v60 = vld [vmem:[#allocation7 + $0xcc] ss:$16 sps:$4 sm:$0xff]   ;;  %v1375_v61 = vld [vmem:[#allocation7 + $0xc8] ss:$16 sps:$4 sm:$0xff]  }
  0x6e   :  { %639 = vmatpush1.bf16.msra.mxu1 %v1335_v23  ;;  %1060 = vmatpush1.bf16.msra.mxu0 %v1419_v62  ;;  %v1762_v23 = vsub.s32 1, %v1756_v19  ;;  %v1380_v62 = vld [vmem:[#allocation7 + $0xec] ss:$16 sps:$4 sm:$0xff]  }
  0x6f   :  { %640 = vmatprep.subr.bf16.mxu1 %v1336_v38  ;;  %1061 = vmatprep.subr.bf16.mxu0 %v1420_v63  ;;  %v1378_v63 = vld [vmem:[#allocation7 + $0xe8] ss:$16 sps:$4 sm:$0xff]  }
  0x72   :  { %641 = vmatpush1.bf16.msra.mxu1 %v1338_v39 }
  0x73   :  { %642 = vmatprep.subr.bf16.mxu1 %v1339_v40 }
  0x76   :  { %643 = vmatpush1.bf16.msra.mxu1 %v1341_v41 }
  0x77   :  { %644 = vmatprep.subr.bf16.mxu1 %v1342_v42 }
  0x7a   :  { %645 = vmatpush1.bf16.msra.mxu1 %v1344_v43 }
  0x7b   :  { %646 = vmatprep.subr.bf16.mxu1 %v1345_v44 }
  0x7e   :  { %647 = vmatpush1.bf16.msra.mxu1 %v1347_v45 }
  0x7f   :  { %648 = vmatprep.subr.bf16.mxu1 %v1348_v46 }
  0x82   :  { %649 = vmatpush1.bf16.msra.mxu1 %v1350_v47 }
  0x83   :  { %650 = vmatprep.subr.bf16.mxu1 %v1351_v48 }
  0x86   :  { %651 = vmatpush1.bf16.msra.mxu1 %v1353_v49 }
  0x87   :  { %652 = vmatprep.subr.bf16.mxu1 %v1354_v50  ;;  %v1357_v50 = vld [vmem:[#allocation7 + $0x8] ss:$16 sps:$4 sm:$0xff]  }
  0x8a   :  { %653 = vmatpush1.bf16.msra.mxu1 %v1356_v51  ;;  %v1360_v51 = vld [vmem:[#allocation7 + $0x28] ss:$16 sps:$4 sm:$0xff]  }
  0x8b   :  { %665 = vmatprep.subr.bf16.mxu1 %v1359_v52  ;;  %v1365_v52 = vld [vmem:[#allocation7 + $0x4c] ss:$16 sps:$4 sm:$0xff]  }
  0xda   :  { %v218_v24 = vpop.xlane.xlu0 %217 }
  0xdb   :  { %v223_v25 = vmul.f32 0.00390625, %v218_v24  ;;  %v1443_v24 = vld [vmem:[#allocation8 + $0xc0] ss:$8 sps:$4 sm:$0xff]  }
  0xdd   :  { %v1740_v26 = vsub.f32 %v212_v0, %v223_v25  ;;  %v1742_v27 = vsub.f32 %v213_v1, %v223_v25  ;;  %v1422_v0 = vld [vmem:[#allocation8 + $0x50] ss:$8 sps:$4 sm:$0xff]   ;;  %v1423_v1 = vld [vmem:[#allocation8 + $0x64] ss:$8 sps:$4 sm:$0xff]   ;;  %v80_v25 = vld [vmem:[%s1829_s1] sm:$0x3] }
  0xde   :  { %v221_v28 = vpop.xlane.xlu0 %220  ;;  %1062 = vmatpush1.bf16.msra.mxu0 %v1422_v0  ;;  %v1383_v0 = vld [vmem:[#allocation7 + $0x10c] ss:$16 sps:$4 sm:$0xff]  }
  0xdf   :  { %v224_v29 = vmul.f32 0.00390625, %v221_v28  ;;  %v229_v30 = vmul.f32 %v1740_v26, %v1740_v26  ;;  %v230_v31 = vmul.f32 %v1742_v27, %v1742_v27  ;;  %1063 = vmatprep.subr.bf16.mxu0 %v1423_v1  ;;  %v1444_v28 = vld [vmem:[#allocation8 + $0xd4] ss:$8 sps:$4 sm:$0xff]   ;;  %v1381_v1 = vld [vmem:[#allocation7 + $0x108] ss:$16 sps:$4 sm:$0xff]  }
  0xe1   :  { %v1748_v32 = vsub.f32 %v214_v2, %v224_v29  ;;  %v1750_v33 = vsub.f32 %v215_v4, %v224_v29  ;;  %v233_v34 = vadd.f32 %v230_v31, %v229_v30  ;;  %v1425_v2 = vld [vmem:[#allocation8 + $0x60] ss:$8 sps:$4 sm:$0xff]   ;;  %v1428_v4 = vld [vmem:[#allocation8 + $0x70] ss:$8 sps:$4 sm:$0xff]   ;;  %v81_v30 = vld [vmem:[#allocation5] sm:$0x3] }
  0xe2   :  { %1064 = vmatpush1.bf16.msra.mxu0 %v1425_v2  ;;  %v268_v39 = vrot.slane %v81_v30, %v1759_v22  ;;  %v272_v40 = vrot.slane %v81_v30, %v1762_v23  ;;  %v1386_v2 = vld [vmem:[#allocation7 + $0x12c] ss:$16 sps:$4 sm:$0xff]  }
  0xe3   :  { %234 = vadd.xlane.f32.xlu1 %v233_v34  ;;  %v231_v35 = vmul.f32 %v1748_v32, %v1748_v32  ;;  %v232_v36 = vmul.f32 %v1750_v33, %v1750_v33  ;;  %1065 = vmatprep.subr.bf16.mxu0 %v1426_v3  ;;  %v253_v34 = vrot.slane %v80_v25, %v1759_v22  ;;  %v1384_v3 = vld [vmem:[#allocation7 + $0x128] ss:$16 sps:$4 sm:$0xff]  }
  0xe5   :  { %v236_v37 = vadd.f32 %v232_v36, %v231_v35  ;;  %v257_v35 = vrot.slane %v80_v25, %v1762_v23 }
  0xe6   :  { %1066 = vmatpush1.bf16.msra.mxu0 %v1428_v4  ;;  %v1389_v4 = vld [vmem:[#allocation7 + $0x14c] ss:$16 sps:$4 sm:$0xff]  }
  0xe7   :  { %237 = vadd.xlane.f32.xlu1 %v236_v37  ;;  %1067 = vmatprep.subr.bf16.mxu0 %v1429_v5  ;;  %v1446_v37 = vld [vmem:[#allocation8 + $0xd0] ss:$8 sps:$4 sm:$0xff]  }
  0xe8   :  { %v1387_v5 = vld [vmem:[#allocation7 + $0x148] ss:$16 sps:$4 sm:$0xff]  }
  0xea   :  { %1068 = vmatpush1.bf16.msra.mxu0 %v1431_v6  ;;  %v1392_v6 = vld [vmem:[#allocation7 + $0x16c] ss:$16 sps:$4 sm:$0xff]  }
  0xeb   :  { %1069 = vmatprep.subr.bf16.mxu0 %v1432_v7  ;;  %v1390_v7 = vld [vmem:[#allocation7 + $0x168] ss:$16 sps:$4 sm:$0xff]  }
  0xee   :  { %1070 = vmatpush1.bf16.msra.mxu0 %v1434_v9  ;;  %v1393_v9 = vld [vmem:[#allocation7 + $0x188] ss:$16 sps:$4 sm:$0xff]  }
  0xef   :  { %1071 = vmatprep.subr.bf16.mxu0 %v1435_v11  ;;  %v1396_v11 = vld [vmem:[#allocation7 + $0x1a8] ss:$16 sps:$4 sm:$0xff]  }
  0xf2   :  { %1072 = vmatpush1.bf16.msra.mxu0 %v1437_v15  ;;  %v1402_v15 = vld [vmem:[#allocation7 + $0x1e8] ss:$16 sps:$4 sm:$0xff]  }
  0xf3   :  { %1073 = vmatprep.subr.bf16.mxu0 %v1438_v17  ;;  %v1449_v17 = vld [vmem:[#allocation8 + $0xe0] ss:$8 sps:$4 sm:$0xff]  }
  0xf6   :  { %1074 = vmatpush1.bf16.msra.mxu0 %v1440_v20  ;;  %v1452_v20 = vld [vmem:[#allocation8 + $0xf0] ss:$8 sps:$4 sm:$0xff]  }
  0xf7   :  { %1075 = vmatprep.subr.bf16.mxu0 %v1441_v21  ;;  %v1455_v21 = vld [vmem:[#allocation8 + $0x104] ss:$8 sps:$4 sm:$0xff]  }
  0xfa   :  { %1076 = vmatpush1.bf16.msra.mxu0 %v1443_v24  ;;  %v1794_v24 = vld [vmem:[%s1832_s4] sm:$0xf] }
  0xfb   :  { %1077 = vmatprep.subr.bf16.mxu0 %v1444_v28  ;;  %v285_v25 = vrot.slane %v1794_v24, %v1759_v22  ;;  %v289_v28 = vrot.slane %v1794_v24, %v1762_v23 }
  0xfe   :  { %1078 = vmatpush1.bf16.msra.mxu0 %v1446_v37 }
 0x170   :  { %v235_v8 = vpop.xlane.xlu1 %234 }
 0x171   :  { %v239_v10 = vmul.f32 0.00390625, %v235_v8  ;;  %v1395_v8 = vld [vmem:[#allocation7 + $0x18c] ss:$16 sps:$4 sm:$0xff]  }
 0x173   :  { %v241_v12 = vadd.f32 1e-05, %v239_v10  ;;  %v1398_v10 = vld [vmem:[#allocation7 + $0x1ac] ss:$16 sps:$4 sm:$0xff]  }
 0x174   :  { %v238_v13 = vpop.xlane.xlu1 %237 }
 0x175   :  { %1501 = vrsqrt.f32 %v241_v12  ;;  %v240_v16 = vmul.f32 0.00390625, %v238_v13  ;;  %v1401_v12 = vld [vmem:[#allocation7 + $0x1cc] ss:$16 sps:$4 sm:$0xff]   ;;  %v1399_v13 = vld [vmem:[#allocation7 + $0x1c8] ss:$16 sps:$4 sm:$0xff]  }
 0x177   :  { %v242_v18 = vadd.f32 1e-05, %v240_v16  ;;  %v1447_v16 = vld [vmem:[#allocation8 + $0xe4] ss:$8 sps:$4 sm:$0xff]  }
 0x178   :  { %1079 = vmatprep.subr.bf16.mxu0 %v1447_v16 }
 0x179   :  { %1503 = vrsqrt.f32 %v242_v18  ;;  %1080 = vmatpush1.bf16.msra.mxu0 %v1449_v17  ;;  %v1450_v18 = vld [vmem:[#allocation8 + $0xf4] ss:$8 sps:$4 sm:$0xff]  }
 0x17a   :  { %1081 = vmatprep.subr.bf16.mxu0 %v1450_v18  ;;  %v1500_v17 = vld [vmem:[#allocation8 + $0x1f4] ss:$8 sps:$4 sm:$0xff]  }
 0x17d   :  { %1082 = vmatpush1.bf16.msra.mxu0 %v1452_v20 }
 0x17e   :  { %1094 = vmatprep.subr.bf16.mxu0 %v1455_v21 }
 0x17f   :  { %v1502_v29 = vpop.eup %1501 }
 0x180   :  { %v246_v31 = vmul.f32 %v1502_v29, %v1742_v27  ;;  %v245_v36 = vmul.f32 %v1502_v29, %v1740_v26 }
 0x182   :  { %v261_v42 = vmul.f32 %v257_v35, %v246_v31  ;;  %v260_v27 = vmul.f32 %v253_v34, %v245_v36 }
 0x183   :  { %v1504_v38 = vpop.eup %1503 }
 0x184   :  { %v248_v41 = vmul.f32 %v1504_v38, %v1750_v33  ;;  %v247_v43 = vmul.f32 %v1504_v38, %v1748_v32  ;;  %v1775_v46 = vadd.f32 %v272_v40, %v261_v42  ;;  %v1779_v47 = vadd.f32 %v268_v39, %v260_v27  ;;  %v1362_v32 = vld [vmem:[#allocation7 + $0x2c] ss:$16 sps:$4 sm:$0xff]  }
 0x186   :  { %v263_v44 = vmul.f32 %v257_v35, %v248_v41  ;;  %v262_v45 = vmul.f32 %v253_v34, %v247_v43 }
 0x188   :  { %v1777_v26 = vadd.f32 %v272_v40, %v263_v44  ;;  %v1781_v48 = vadd.f32 %v268_v39, %v262_v45  ;;  %v1453_v44 = vld [vmem:[#allocation8 + $0x100] ss:$8 sps:$4 sm:$0xff]   ;;  %v1458_v45 = vld [vmem:[#allocation8 + $0x114] ss:$8 sps:$4 sm:$0xff]  }
 0x18a   :  { %v280_v49 = vpack.c.bf16 %v1777_v26, %v1775_v46  ;;  %v1787_v33 = vpack.c.bf16 %v1781_v48, %v1779_v47 }
 0x18c   :  { %654 = vmatprep.mubr.bf16.mxu1 %v280_v49 }
 0x18d   :  { %655 = vmatmul.mubr.bf16.vlgmr.msra.gmra.mrb[0].mxu1 %v1787_v33 }
 0x18e   :  { %666 = vmatpush1.bf16.msra.mxu1 %v1357_v50  ;;  %697 = vmatprep.mubr.bf16.mxu1 %v280_v49  ;;  %v1456_v49 = vld [vmem:[#allocation8 + $0x110] ss:$8 sps:$4 sm:$0xff]   ;;  %v1461_v50 = vld [vmem:[#allocation8 + $0x124] ss:$8 sps:$4 sm:$0xff]  }
 0x18f   :  { %667 = vmatprep.subr.bf16.mxu1 %v1362_v32  ;;  %v1464_v32 = vld [vmem:[#allocation8 + $0x134] ss:$8 sps:$4 sm:$0xff]  }
 0x192   :  { %668 = vmatpush1.bf16.msra.mxu1 %v1360_v51  ;;  %v1462_v51 = vld [vmem:[#allocation8 + $0x130] ss:$8 sps:$4 sm:$0xff]  }
 0x193   :  { %669 = vmatprep.subr.bf16.mxu1 %v1365_v52  ;;  %v1467_v52 = vld [vmem:[#allocation8 + $0x144] ss:$8 sps:$4 sm:$0xff]  }
 0x196   :  { %670 = vmatpush1.bf16.msra.mxu1 %v1363_v53  ;;  %v1465_v53 = vld [vmem:[#allocation8 + $0x140] ss:$8 sps:$4 sm:$0xff]  }
 0x197   :  { %671 = vmatprep.subr.bf16.mxu1 %v1368_v54  ;;  %v1470_v54 = vld [vmem:[#allocation8 + $0x154] ss:$8 sps:$4 sm:$0xff]  }
 0x19a   :  { %672 = vmatpush1.bf16.msra.mxu1 %v1366_v55  ;;  %v1468_v55 = vld [vmem:[#allocation8 + $0x150] ss:$8 sps:$4 sm:$0xff]  }
 0x19b   :  { %673 = vmatprep.subr.bf16.mxu1 %v1371_v56  ;;  %v1473_v56 = vld [vmem:[#allocation8 + $0x164] ss:$8 sps:$4 sm:$0xff]  }
 0x19e   :  { %674 = vmatpush1.bf16.msra.mxu1 %v1369_v57  ;;  %v1471_v57 = vld [vmem:[#allocation8 + $0x160] ss:$8 sps:$4 sm:$0xff]  }
 0x19f   :  { %675 = vmatprep.subr.bf16.mxu1 %v1374_v58  ;;  %v1476_v58 = vld [vmem:[#allocation8 + $0x174] ss:$8 sps:$4 sm:$0xff]  }
 0x1a2   :  { %676 = vmatpush1.bf16.msra.mxu1 %v1372_v59  ;;  %v1474_v59 = vld [vmem:[#allocation8 + $0x170] ss:$8 sps:$4 sm:$0xff]  }
 0x1a3   :  { %677 = vmatprep.subr.bf16.mxu1 %v1377_v60  ;;  %v1479_v60 = vld [vmem:[#allocation8 + $0x184] ss:$8 sps:$4 sm:$0xff]  }
 0x1a6   :  { %678 = vmatpush1.bf16.msra.mxu1 %v1375_v61  ;;  %v1477_v61 = vld [vmem:[#allocation8 + $0x180] ss:$8 sps:$4 sm:$0xff]  }
 0x1a7   :  { %679 = vmatprep.subr.bf16.mxu1 %v1380_v62  ;;  %v1482_v62 = vld [vmem:[#allocation8 + $0x194] ss:$8 sps:$4 sm:$0xff]  }
 0x1aa   :  { %680 = vmatpush1.bf16.msra.mxu1 %v1378_v63  ;;  %v1480_v63 = vld [vmem:[#allocation8 + $0x190] ss:$8 sps:$4 sm:$0xff]  }
 0x1ab   :  { %681 = vmatprep.subr.bf16.mxu1 %v1383_v0  ;;  %v1485_v0 = vld [vmem:[#allocation8 + $0x1a4] ss:$8 sps:$4 sm:$0xff]  }
 0x1ae   :  { %682 = vmatpush1.bf16.msra.mxu1 %v1381_v1  ;;  %v1483_v1 = vld [vmem:[#allocation8 + $0x1a0] ss:$8 sps:$4 sm:$0xff]  }
 0x1af   :  { %683 = vmatprep.subr.bf16.mxu1 %v1386_v2  ;;  %v1488_v2 = vld [vmem:[#allocation8 + $0x1b4] ss:$8 sps:$4 sm:$0xff]  }
 0x1b2   :  { %684 = vmatpush1.bf16.msra.mxu1 %v1384_v3  ;;  %v1486_v3 = vld [vmem:[#allocation8 + $0x1b0] ss:$8 sps:$4 sm:$0xff]  }
 0x1b3   :  { %685 = vmatprep.subr.bf16.mxu1 %v1389_v4  ;;  %v1491_v4 = vld [vmem:[#allocation8 + $0x1c4] ss:$8 sps:$4 sm:$0xff]  }
 0x1b6   :  { %686 = vmatpush1.bf16.msra.mxu1 %v1387_v5  ;;  %v1489_v5 = vld [vmem:[#allocation8 + $0x1c0] ss:$8 sps:$4 sm:$0xff]  }
 0x1b7   :  { %687 = vmatprep.subr.bf16.mxu1 %v1392_v6  ;;  %v1494_v6 = vld [vmem:[#allocation8 + $0x1d4] ss:$8 sps:$4 sm:$0xff]  }
 0x1ba   :  { %688 = vmatpush1.bf16.msra.mxu1 %v1390_v7  ;;  %v292_v7 = vsub.s32 2, %v1756_v19 }
 0x1bb   :  { %689 = vmatprep.subr.bf16.mxu1 %v1395_v8  ;;  %v296_v8 = vsub.s32 3, %v1756_v19 }
 0x1be   :  { %690 = vmatpush1.bf16.msra.mxu1 %v1393_v9  ;;  %v1492_v9 = vld [vmem:[#allocation8 + $0x1d0] ss:$8 sps:$4 sm:$0xff]  }
 0x1bf   :  { %691 = vmatprep.subr.bf16.mxu1 %v1398_v10  ;;  %v293_v10 = vrot.slane %v1794_v24, %v292_v7 }
 0x1c2   :  { %692 = vmatpush1.bf16.msra.mxu1 %v1396_v11  ;;  %v1497_v11 = vld [vmem:[#allocation8 + $0x1e4] ss:$8 sps:$4 sm:$0xff]  }
 0x1c3   :  { %693 = vmatprep.subr.bf16.mxu1 %v1401_v12  ;;  %v297_v12 = vrot.slane %v1794_v24, %v296_v8 }
 0x1c6   :  { %694 = vmatpush1.bf16.msra.mxu1 %v1399_v13 }
 0x1c7   :  { %695 = vmatprep.subr.bf16.mxu1 %v1404_v14  ;;  %v1495_v14 = vld [vmem:[#allocation8 + $0x1e0] ss:$8 sps:$4 sm:$0xff]  }
 0x1ca   :  { %696 = vmatpush1.bf16.msra.mxu1 %v1402_v15 }
 0x1cd   :  { %698 = vmatmul.mubr.bf16.vlgmr.msra.gmra.mrb[4].mxu1 %v1787_v33  ;;  %v1459_v33 = vld [vmem:[#allocation8 + $0x120] ss:$8 sps:$4 sm:$0xff]  }
 0x260   :  { %v656_v29 = vpop.f32.mrb[0].mxu1 }
 0x261   :  { %v657_v30 = vadd.f32 %v656_v29, %v285_v25  ;;  %v658_v31 = vpop.f32.mrb[1].mxu1 }
 0x262   :  { %v659_v34 = vadd.f32 %v658_v31, %v289_v28  ;;  %v660_v35 = vpop.f32.mrb[2].mxu1 }
 0x263   :  { %v661_v36 = vadd.f32 %v660_v35, %v285_v25  ;;  %v662_v37 = vpop.f32.mrb[3].mxu1  ;;  %v708_v39 = vmax.f32 %v657_v30, 0.0 }
 0x264   :  { %v663_v38 = vadd.f32 %v662_v37, %v289_v28  ;;  %v709_v41 = vmax.f32 %v659_v34, 0.0  ;;  %v1498_v28 = vld [vmem:[#allocation8 + $0x1f0] ss:$8 sps:$4 sm:$0xff]  }
 0x265   :  { %v712_v40 = vmax.f32 %v661_v36, 0.0  ;;  %v83_v36 = vld [vmem:[%s1834_s6] sm:$0x3]  ;;  %s1593_s6 = scalar_lea.vmem %s1151_s10, 512 }
 0x266   :  { %v713_v42 = vmax.f32 %v663_v38, 0.0  ;;  %v724_v37 = vrot.slane %v83_v36, %v1759_v22  ;;  %v728_v38 = vrot.slane %v83_v36, %v1762_v23  ;;  %p1594_p4 = scmp.ne.s32.totalorder %s1151_s10, %s1593_s6  ;;  %p1599_p6 = scmp.lt.s32.totalorder %s1593_s6, %s1593_s6 }
 0x267   :  { %v716_v43 = vpack.c.bf16 %v712_v40, %v708_v39 }
 0x268   :  { %v717_v27 = vpack.c.bf16 %v713_v42, %v709_v41  ;;  %p1600_p7 = por %p1599_p6, %p1598_p5 }
 0x26a   :  { %1083 = vmatprep.mubr.bf16.mxu0 %v717_v27  ;;  %p1601_p8 = pnand %p1600_p7, %p1594_p4 }
 0x26b   :  { %1084 = vmatmul.mubr.bf16.vlgmr.msra.gmra.mrb[0].mxu0 %v716_v43 }
 0x26c   :  { %1095 = vmatpush1.bf16.msra.mxu0 %v1453_v44 }
 0x26d   :  { %1096 = vmatprep.subr.bf16.mxu0 %v1458_v45 }
 0x270   :  { %1097 = vmatpush1.bf16.msra.mxu0 %v1456_v49 }
 0x271   :  { %1098 = vmatprep.subr.bf16.mxu0 %v1461_v50 }
 0x274   :  { %1099 = vmatpush1.bf16.msra.mxu0 %v1459_v33 }
 0x275   :  { %1100 = vmatprep.subr.bf16.mxu0 %v1464_v32 }
 0x278   :  { %1101 = vmatpush1.bf16.msra.mxu0 %v1462_v51 }
 0x279   :  { %1102 = vmatprep.subr.bf16.mxu0 %v1467_v52 }
 0x27c   :  { %1103 = vmatpush1.bf16.msra.mxu0 %v1465_v53 }
 0x27d   :  { %1104 = vmatprep.subr.bf16.mxu0 %v1470_v54 }
 0x280   :  { %1105 = vmatpush1.bf16.msra.mxu0 %v1468_v55 }
 0x281   :  { %1106 = vmatprep.subr.bf16.mxu0 %v1473_v56 }
 0x284   :  { %1107 = vmatpush1.bf16.msra.mxu0 %v1471_v57 }
 0x285   :  { %1108 = vmatprep.subr.bf16.mxu0 %v1476_v58 }
 0x288   :  { %1109 = vmatpush1.bf16.msra.mxu0 %v1474_v59 }
 0x289   :  { %1110 = vmatprep.subr.bf16.mxu0 %v1479_v60 }
 0x28c   :  { %1111 = vmatpush1.bf16.msra.mxu0 %v1477_v61 }
 0x28d   :  { %1112 = vmatprep.subr.bf16.mxu0 %v1482_v62 }
 0x290   :  { %1113 = vmatpush1.bf16.msra.mxu0 %v1480_v63 }
 0x291   :  { %1114 = vmatprep.subr.bf16.mxu0 %v1485_v0 }
 0x294   :  { %1115 = vmatpush1.bf16.msra.mxu0 %v1483_v1 }
 0x295   :  { %1116 = vmatprep.subr.bf16.mxu0 %v1488_v2 }
 0x298   :  { %1117 = vmatpush1.bf16.msra.mxu0 %v1486_v3 }
 0x299   :  { %1118 = vmatprep.subr.bf16.mxu0 %v1491_v4 }
 0x29c   :  { %1119 = vmatpush1.bf16.msra.mxu0 %v1489_v5 }
 0x29d   :  { %1120 = vmatprep.subr.bf16.mxu0 %v1494_v6 }
 0x2a0   :  { %v699_v13 = vpop.f32.mrb[4].mxu1  ;;  %1121 = vmatpush1.bf16.msra.mxu0 %v1492_v9 }
 0x2a1   :  { %v700_v15 = vadd.f32 %v699_v13, %v293_v10  ;;  %v701_v16 = vpop.f32.mrb[5].mxu1  ;;  %1122 = vmatprep.subr.bf16.mxu0 %v1497_v11 }
 0x2a2   :  { %v702_v18 = vadd.f32 %v701_v16, %v297_v12  ;;  %v703_v20 = vpop.f32.mrb[6].mxu1 }
 0x2a3   :  { %v704_v21 = vadd.f32 %v703_v20, %v293_v10  ;;  %v705_v25 = vpop.f32.mrb[7].mxu1  ;;  %v710_v29 = vmax.f32 %v700_v15, 0.0 }
 0x2a4   :  { %v706_v19 = vadd.f32 %v705_v25, %v297_v12  ;;  %1123 = vmatpush1.bf16.msra.mxu0 %v1495_v14  ;;  %v711_v31 = vmax.f32 %v702_v18, 0.0 }
 0x2a5   :  { %v714_v30 = vmax.f32 %v704_v21, 0.0  ;;  %1124 = vmatprep.subr.bf16.mxu0 %v1500_v17 }
 0x2a6   :  { %v715_v34 = vmax.f32 %v706_v19, 0.0 }
 0x2a7   :  { %v718_v24 = vpack.c.bf16 %v714_v30, %v710_v29 }
 0x2a8   :  { %v719_v35 = vpack.c.bf16 %v715_v34, %v711_v31  ;;  %1125 = vmatpush1.bf16.msra.mxu0 %v1498_v28 }
 0x2aa   :  { %1126 = vmatprep.mubr.bf16.mxu0 %v719_v35 }
 0x2ab   :  { %1127 = vmatmul.mubr.bf16.vlgmr.msra.gmra.mrb[0].mxu0 %v718_v24 }
 0x37e   :  { %v1128_v39 = vpop.f32.mrb[0].mxu0 }
 0x37f   :  { %v1292_v40 = vadd.f32 %v1128_v39, %v724_v37  ;;  %v1130_v41 = vpop.f32.mrb[1].mxu0 }
 0x380   :  { %v1293_v42 = vadd.f32 %v1130_v41, %v728_v38  ;;  %v1132_v43 = vpop.f32.mrb[2].mxu0 }
 0x381   :  { %v1137_v27 = vadd.f32 %v1292_v40, %v1779_v47  ;;  %v1294_v44 = vadd.f32 %v1132_v43, %v724_v37  ;;  %v1134_v45 = vpop.f32.mrb[3].mxu0 }
 0x382   :  { %v1138_v49 = vadd.f32 %v1293_v42, %v1775_v46  ;;  %v1295_v50 = vadd.f32 %v1134_v45, %v728_v38 }
 0x383   :  { %1141 = vst [vmem:[#allocation10] sm:$0xff] %v1137_v27  ;;  %v1139_v33 = vadd.f32 %v1294_v44, %v1781_v48 }
 0x384   :  { %1142 = vst [vmem:[#allocation10 + $0x8] sm:$0xff] %v1138_v49  ;;  %v1140_v22 = vadd.f32 %v1295_v50, %v1777_v26 }
 0x385   :  { %1143 = vst [vmem:[#allocation10 + $0x10] sm:$0xff] %v1139_v33 }
 0x386   :  { %1144 = vst [vmem:[#allocation10 + $0x18] sm:$0xff] %v1140_v22 }
 0x387   :  { %1604 = shalt.err (!%p1601_p8)
}
 0x388   :  { %s1605_s13 = scalar_lea.hbm %s1835_s7, 512 }
 0x389   :  { %p1606_p9 = scmp.ne.s32.totalorder %s1835_s7, %s1605_s13  ;;  %p1609_p10 = scmp.lt.u32.totalorder %s1605_s13, %s1835_s7 }
 0x38b   :  { %p1611_p11 = pnand %p1609_p10, %p1606_p9 }
 0x38d   :  { %1614 = shalt.err (!%p1611_p11)
}
 0x38e   :  { %1156 = dma.vmem_to_hbm [thread:$0]  %s1151_s10, 512, %s1835_s7, [#allocation4], %s1625_s2, %s1625_s2, %s1626_s23  }
 0x38f   :  { %1621 = dma.done.wait [#allocation4], 512  }
 0x390   :  { %1622 = vsyncadd [#allocation4], 4294966784 }
 0x391   :  { %1160 = vsyncpa [#allocation3], 1 }
 0x392   :  { %1161 = vsyncpa [#allocation6], 1 }
 0x393   :  { %1162 = vsyncpa [#allocation9], 1 }
 0x394   :  { %1163 = vsyncpa [#allocation4], 1 }

</bundles_post_ra>
